<compile_context>
chip_gen: v7x
topology: tpu7x:2x2x1
jax: 0.10.0
libtpu: 0.0.40
codegen_flags: <defaults>
</compile_context>

<pallas_src>
import functools

import jax
import jax.numpy as jnp
from jax.experimental import pallas as pl
from jax.experimental.pallas import tpu as pltpu

EPS = 1e-5  # nn.BatchNorm1d default eps


# --------------------------------- kernel -----------------------------------
def residual_block_kernel(*refs, K, P, L, N, Cx, Cp, has_proj, compute_dtype):
    if has_proj:
        (x_ref, w1_ref, g1_ref, be1_ref, w2_ref, g2_ref, be2_ref,
         ws_ref, bs_ref, o_ref) = refs
    else:
        (x_ref, w1_ref, g1_ref, be1_ref, w2_ref, g2_ref, be2_ref, o_ref) = refs

    # x_ref: (N, L+2P, Cx) f32, already halo-padded along L by the wrapper.
    x_f32 = x_ref[...]

    def conv(src_f32, w_ref, cin):
        # K accumulated matmuls on shifted (static sublane-slice) views of the
        # padded source.  Slicing / reshaping stays in f32 (plain 32-bit
        # relayouts); each operand is cast to compute_dtype just before the
        # MXU.  Accumulation is f32.
        acc = None
        for k in range(K):  # static, unrolled
            a = src_f32[:, k:k + L, :].reshape(N * L, cin).astype(compute_dtype)
            p = jnp.dot(a, w_ref[k], preferred_element_type=jnp.float32)
            acc = p if acc is None else acc + p
        return acc  # (N*L, Cp) f32

    def bn_train(y, gamma_row, beta_row):
        # Training-mode BN over rows (N*L): shifted two-pass (biased) variance,
        # gamma*rsqrt folded into one per-channel scale + shift.
        mu = jnp.mean(y, axis=0, keepdims=True)
        var = jnp.mean(jnp.square(y - mu), axis=0, keepdims=True)
        scale = gamma_row * jax.lax.rsqrt(var + EPS)
        shift = beta_row - mu * scale
        return y * scale + shift

    # ---- conv1 (bias cancelled by BN1) + bn1 + relu ----
    y1 = conv(x_f32, w1_ref, Cx)
    h = jnp.maximum(bn_train(y1, g1_ref[...], be1_ref[...]), 0.0)  # (N*L, Cp) f32

    # ---- conv2: zero-halo pad h along L with a single sublane concat ----
    h_nlc = h.reshape(N, L, Cp)
    if P > 0:
        zrow = jnp.zeros((N, P, Cp), jnp.float32)
        h_pad = jnp.concatenate([zrow, h_nlc, zrow], axis=1)  # (N, L+2P, Cp)
    else:
        h_pad = h_nlc
    y2 = bn_train(conv(h_pad, w2_ref, Cp), g2_ref[...], be2_ref[...])

    # ---- shortcut: centre rows of the padded x are the unshifted input ----
    if has_proj:
        xc = x_f32[:, P:P + L, :].reshape(N * L, Cx).astype(compute_dtype)
        identity = jnp.dot(xc, ws_ref[...],
                           preferred_element_type=jnp.float32) + bs_ref[...]
    else:
        # Cin == Cout (and Cx == Cp): exact f32 residual, no extra operand.
        identity = x_f32[:, P:P + L, :].reshape(N * L, Cp)

    out = jnp.maximum(y2 + identity, 0.0)
    o_ref[...] = out.reshape(N, L, Cp).astype(o_ref.dtype)


# -------------------------------- wrapper ------------------------------------
def residual_block(x_ncl, params, *, kernel_size, padding,
                   compute_dtype=jnp.bfloat16, channel_pad=None):
    N, Cin, L = x_ncl.shape
    Cout = params["w1"].shape[0]
    K, P = kernel_size, padding
    # The residual add requires 'same'-length convs (implicit in the module).
    assert 2 * P == K - 1, "residual add requires 2*padding == kernel_size - 1"
    has_proj = Cin != Cout

    # Lane-dense channel padding: pad Cout to a multiple of 128 only when the
    # blow-up is <= ~2x; for tiny channel counts it only inflates HBM writes.
    # TODO(synk): for very small channel counts the real fix is a transposed
    # layout with N*L on lanes (BN becomes a lane reduction); not implemented.
    LANE = 128
    if channel_pad is None:
        channel_pad = Cout >= 64
    Cp = ((Cout + LANE - 1) // LANE) * LANE if channel_pad else Cout
    cpad = Cp - Cout
    # Identity shortcut with padded channels: pad x's channels too, so both the
    # conv1 operand and the residual slice are already Cp lanes wide.
    Cx = Cp if (not has_proj and cpad > 0) else Cin

    # Single padded copy of x in NLC (one fused XLA transpose+pad).  The kernel
    # builds every conv tap from static sublane slices of this copy -- no
    # K-fold im2col is ever materialised in HBM.
    x_nlc = jnp.transpose(x_ncl, (0, 2, 1)).astype(jnp.float32)   # (N, L, Cin)
    x_pad = jnp.pad(x_nlc, ((0, 0), (P, P), (0, Cx - Cin)))       # (N, L+2P, Cx)

    def repack_conv(w, cin_to):
        # torch (Cout, cin, K) -> (K, cin_to, Cp) in compute_dtype, zero-padded.
        wk = jnp.transpose(w, (2, 1, 0))                          # (K, cin, Cout)
        wk = jnp.pad(wk, ((0, 0), (0, cin_to - w.shape[1]), (0, cpad)))
        return wk.astype(compute_dtype)

    def row(v):
        return jnp.pad(v.reshape(1, -1), ((0, 0), (0, cpad))).astype(jnp.float32)

    args = [x_pad,
            repack_conv(params["w1"], Cx), row(params["g1"]), row(params["be1"]),
            repack_conv(params["w2"], Cp), row(params["g2"]), row(params["be2"])]
    if has_proj:
        ws = jnp.pad(jnp.transpose(params["ws"][:, :, 0], (1, 0)),
                     ((0, 0), (0, cpad))).astype(compute_dtype)   # (Cin, Cp)
        args += [ws, row(params["bs"])]                           # bias matters (no BN after)

    # Per-generation VMEM budget with headroom (v7x: 64 MiB physical -> ~48 MiB).
    vmem_cap = 128 * 1024 * 1024
    try:
        vmem_cap = int(getattr(pltpu.get_tpu_info(), "vmem_capacity_bytes", vmem_cap))
    except Exception:
        pass
    vmem_limit = max(32 * 1024 * 1024,
                     min(vmem_cap - 16 * 1024 * 1024, 100 * 1024 * 1024))

    kern = functools.partial(
        residual_block_kernel, K=K, P=P, L=L, N=N, Cx=Cx, Cp=Cp,
        has_proj=has_proj, compute_dtype=compute_dtype)

    # TODO(synk): training-mode BN needs full-batch statistics between the two
    # convs, so this stays a single gridless fused call while activations fit
    # VMEM (HBM-optimal: x read once, out written once).  For larger N*L,
    # switch to a row-tiled grid with two-pass BN (pass 1: conv1 + per-channel
    # sum/sumsq accumulators over an "arbitrary" axis; pass 2: bn1+relu, conv2
    # with row halos, bn2 stats; pass 3: finalise + residual), and mark the row
    # axis "parallel" so v7x's two TensorCores split it.
    out = pl.pallas_call(
        kern,
        out_shape=jax.ShapeDtypeStruct((N, L, Cp), jnp.float32),
        in_specs=[pl.BlockSpec(memory_space=pltpu.MemorySpace.VMEM)] * len(args),
        out_specs=pl.BlockSpec(memory_space=pltpu.MemorySpace.VMEM),
        compiler_params=pltpu.CompilerParams(vmem_limit_bytes=vmem_limit),
    )(*args)

    # Back to the PyTorch NCL contract; the padded-lane slice fuses with this
    # transpose in XLA.  TODO(synk): keep NLC end-to-end if the caller allows.
    return jnp.transpose(out[:, :, :Cout], (0, 2, 1))


# --------------------------- pure-JAX reference ------------------------------
def reference(x, params, *, kernel_size, padding):
    def conv1d(x, w, b, pad):
        y = jax.lax.conv_general_dilated(
            x, w, window_strides=(1,), padding=[(pad, pad)],
            dimension_numbers=("NCH", "OIH", "NCH"))
        return y + b[None, :, None]

    def bn(y, g, b):
        mu = jnp.mean(y, axis=(0, 2), keepdims=True)
        var = jnp.mean((y - mu) ** 2, axis=(0, 2), keepdims=True)
        return (y - mu) * jax.lax.rsqrt(var + EPS) * g[None, :, None] + b[None, :, None]

    Cin, Cout = x.shape[1], params["w1"].shape[0]
    identity = conv1d(x, params["ws"], params["bs"], 0) if Cin != Cout else x
    out = jax.nn.relu(bn(conv1d(x, params["w1"], params["b1"], padding),
                         params["g1"], params["be1"]))
    out = bn(conv1d(out, params["w2"], params["b2"], padding),
             params["g2"], params["be2"])
    return jax.nn.relu(out + identity)


# --------------------------------- tests -------------------------------------
def make_params(key, cin, cout, k):
    ks = jax.random.split(key, 10)
    p = {
        "w1": jax.random.normal(ks[0], (cout, cin, k), jnp.float32) * 0.2,
        "b1": jax.random.normal(ks[1], (cout,), jnp.float32) * 0.1,
        "g1": 1.0 + 0.1 * jax.random.normal(ks[2], (cout,), jnp.float32),
        "be1": 0.1 * jax.random.normal(ks[3], (cout,), jnp.float32),
        "w2": jax.random.normal(ks[4], (cout, cout, k), jnp.float32) * 0.2,
        "b2": jax.random.normal(ks[5], (cout,), jnp.float32) * 0.1,
        "g2": 1.0 + 0.1 * jax.random.normal(ks[6], (cout,), jnp.float32),
        "be2": 0.1 * jax.random.normal(ks[7], (cout,), jnp.float32),
    }
    if cin != cout:
        p["ws"] = jax.random.normal(ks[8], (cout, cin, 1), jnp.float32) * 0.3
        p["bs"] = jax.random.normal(ks[9], (cout,), jnp.float32) * 0.1
    return p


def check(x, params, K, P, compute_dtype, rtol, atol):
    ref = reference(x, params, kernel_size=K, padding=P)
    out = jax.block_until_ready(
        residual_block(x, params, kernel_size=K, padding=P,
                       compute_dtype=compute_dtype))
    assert out.shape == ref.shape, (out.shape, ref.shape)
    err = float(jnp.max(jnp.abs(out - ref)))
    assert jnp.allclose(out, ref, rtol=rtol, atol=atol), err


if __name__ == "__main__":
    N, L, K, P = 2, 16, 3, 1
    key = jax.random.PRNGKey(0)
    k_par, k_x = jax.random.split(key)

    # Case 1: projection shortcut, tiny channels (no lane padding): f32 & bf16.
    p1 = make_params(jax.random.fold_in(k_par, 1), 4, 8, K)
    x1 = jax.random.normal(jax.random.fold_in(k_x, 1), (N, 4, L), jnp.float32)
    check(x1, p1, K, P, jnp.float32, 1e-4, 1e-4)
    check(x1, p1, K, P, jnp.bfloat16, 5e-2, 5e-2)

    # Case 2: identity shortcut, tiny channels (no lane padding).
    p2 = make_params(jax.random.fold_in(k_par, 2), 8, 8, K)
    x2 = jax.random.normal(jax.random.fold_in(k_x, 2), (N, 8, L), jnp.float32)
    check(x2, p2, K, P, jnp.float32, 1e-4, 1e-4)

    # Case 3: identity shortcut, Cout=64 -> lane-padded to 128 (padded x path).
    p3 = make_params(jax.random.fold_in(k_par, 3), 64, 64, K)
    x3 = jax.random.normal(jax.random.fold_in(k_x, 3), (N, 64, L), jnp.float32)
    check(x3, p3, K, P, jnp.float32, 1e-4, 1e-4)

    # Case 4: projection shortcut, Cout=64 -> lane-padded to 128 (padded ws/bs).
    p4 = make_params(jax.random.fold_in(k_par, 4), 16, 64, K)
    x4 = jax.random.normal(jax.random.fold_in(k_x, 4), (N, 16, L), jnp.float32)
    check(x4, p4, K, P, jnp.float32, 1e-4, 1e-4)

    print("KERNEL_OK")
</pallas_src>

<mosaic_0001>
module attributes {stable_mosaic.version = 11 : i64} {
  func.func @residual_block_kernel(%arg0: memref<2x18x4xf32, #tpu.memory_space<vmem>>, %arg1: memref<3x4x8xf32, #tpu.memory_space<vmem>>, %arg2: memref<1x8xf32, #tpu.memory_space<vmem>>, %arg3: memref<1x8xf32, #tpu.memory_space<vmem>>, %arg4: memref<3x8x8xf32, #tpu.memory_space<vmem>>, %arg5: memref<1x8xf32, #tpu.memory_space<vmem>>, %arg6: memref<1x8xf32, #tpu.memory_space<vmem>>, %arg7: memref<4x8xf32, #tpu.memory_space<vmem>>, %arg8: memref<1x8xf32, #tpu.memory_space<vmem>>, %arg9: memref<2x16x8xf32, #tpu.memory_space<vmem>>) attributes {dimension_semantics = [], scalar_prefetch = 0 : i64, scratch_operands = 0 : i64, tpu.core_type = #tpu.core_type<tc>} {
    %c0 = arith.constant 0 : index
    %c0_0 = arith.constant 0 : index
    %c0_1 = arith.constant 0 : index
    %0 = vector.load %arg0[%c0, %c0_0, %c0_1] : memref<2x18x4xf32, #tpu.memory_space<vmem>>, vector<2x18x4xf32>
    %1 = vector.extract_strided_slice %0 {offsets = [0, 0, 0], sizes = [2, 16, 4], strides = [1, 1, 1]} : vector<2x18x4xf32> to vector<2x16x4xf32>
    %2 = vector.shape_cast %1 : vector<2x16x4xf32> to vector<32x4xf32>
    %c0_2 = arith.constant 0 : index
    %c0_3 = arith.constant 0 : index
    %c0_4 = arith.constant 0 : index
    %3 = vector.load %arg1[%c0_2, %c0_3, %c0_4] : memref<3x4x8xf32, #tpu.memory_space<vmem>>, vector<1x4x8xf32>
    %4 = vector.shape_cast %3 : vector<1x4x8xf32> to vector<4x8xf32>
    %cst = arith.constant dense<0.000000e+00> : vector<32x8xf32>
    %5 = tpu.matmul %2, %4, %cst {dimension_numbers = #tpu.dot_dimension_numbers<[1], [0], [0], [1], [0, 0, 1, 1], [], []>} : vector<32x4xf32>, vector<4x8xf32>, vector<32x8xf32> -> vector<32x8xf32>
    %6 = vector.extract_strided_slice %0 {offsets = [0, 1, 0], sizes = [2, 16, 4], strides = [1, 1, 1]} : vector<2x18x4xf32> to vector<2x16x4xf32>
    %7 = vector.shape_cast %6 : vector<2x16x4xf32> to vector<32x4xf32>
    %c1 = arith.constant 1 : index
    %c0_5 = arith.constant 0 : index
    %c0_6 = arith.constant 0 : index
    %8 = vector.load %arg1[%c1, %c0_5, %c0_6] : memref<3x4x8xf32, #tpu.memory_space<vmem>>, vector<1x4x8xf32>
    %9 = vector.shape_cast %8 : vector<1x4x8xf32> to vector<4x8xf32>
    %cst_7 = arith.constant dense<0.000000e+00> : vector<32x8xf32>
    %10 = tpu.matmul %7, %9, %cst_7 {dimension_numbers = #tpu.dot_dimension_numbers<[1], [0], [0], [1], [0, 0, 1, 1], [], []>} : vector<32x4xf32>, vector<4x8xf32>, vector<32x8xf32> -> vector<32x8xf32>
    %11 = arith.addf %5, %10 : vector<32x8xf32>
    %12 = vector.extract_strided_slice %0 {offsets = [0, 2, 0], sizes = [2, 16, 4], strides = [1, 1, 1]} : vector<2x18x4xf32> to vector<2x16x4xf32>
    %13 = vector.shape_cast %12 : vector<2x16x4xf32> to vector<32x4xf32>
    %c2 = arith.constant 2 : index
    %c0_8 = arith.constant 0 : index
    %c0_9 = arith.constant 0 : index
    %14 = vector.load %arg1[%c2, %c0_8, %c0_9] : memref<3x4x8xf32, #tpu.memory_space<vmem>>, vector<1x4x8xf32>
    %15 = vector.shape_cast %14 : vector<1x4x8xf32> to vector<4x8xf32>
    %cst_10 = arith.constant dense<0.000000e+00> : vector<32x8xf32>
    %16 = tpu.matmul %13, %15, %cst_10 {dimension_numbers = #tpu.dot_dimension_numbers<[1], [0], [0], [1], [0, 0, 1, 1], [], []>} : vector<32x4xf32>, vector<4x8xf32>, vector<32x8xf32> -> vector<32x8xf32>
    %17 = arith.addf %11, %16 : vector<32x8xf32>
    %c0_11 = arith.constant 0 : index
    %c0_12 = arith.constant 0 : index
    %18 = vector.load %arg2[%c0_11, %c0_12] : memref<1x8xf32, #tpu.memory_space<vmem>>, vector<1x8xf32>
    %c0_13 = arith.constant 0 : index
    %c0_14 = arith.constant 0 : index
    %19 = vector.load %arg3[%c0_13, %c0_14] : memref<1x8xf32, #tpu.memory_space<vmem>>, vector<1x8xf32>
    %cst_15 = arith.constant dense<0.000000e+00> : vector<8xf32>
    %20 = vector.multi_reduction <add>, %17, %cst_15 [0] : vector<32x8xf32> to vector<8xf32>
    %21 = vector.shape_cast %20 : vector<8xf32> to vector<1x8xf32>
    %cst_16 = arith.constant 3.200000e+01 : f32
    %22 = vector.broadcast %cst_16 : f32 to vector<1x8xf32>
    %23 = arith.divf %21, %22 : vector<1x8xf32>
    %24 = vector.broadcast %23 : vector<1x8xf32> to vector<32x8xf32>
    %25 = arith.subf %17, %24 : vector<32x8xf32>
    %26 = arith.mulf %25, %25 : vector<32x8xf32>
    %cst_17 = arith.constant dense<0.000000e+00> : vector<8xf32>
    %27 = vector.multi_reduction <add>, %26, %cst_17 [0] : vector<32x8xf32> to vector<8xf32>
    %28 = vector.shape_cast %27 : vector<8xf32> to vector<1x8xf32>
    %cst_18 = arith.constant 3.200000e+01 : f32
    %29 = vector.broadcast %cst_18 : f32 to vector<1x8xf32>
    %30 = arith.divf %28, %29 : vector<1x8xf32>
    %cst_19 = arith.constant 9.99999974E-6 : f32
    %31 = vector.broadcast %cst_19 : f32 to vector<1x8xf32>
    %32 = arith.addf %30, %31 : vector<1x8xf32>
    %33 = math.rsqrt %32 : vector<1x8xf32>
    %34 = arith.mulf %18, %33 : vector<1x8xf32>
    %35 = arith.mulf %23, %34 : vector<1x8xf32>
    %36 = arith.subf %19, %35 : vector<1x8xf32>
    %37 = vector.broadcast %34 : vector<1x8xf32> to vector<32x8xf32>
    %38 = arith.mulf %17, %37 : vector<32x8xf32>
    %39 = vector.broadcast %36 : vector<1x8xf32> to vector<32x8xf32>
    %40 = arith.addf %38, %39 : vector<32x8xf32>
    %cst_20 = arith.constant 0.000000e+00 : f32
    %41 = vector.broadcast %cst_20 : f32 to vector<32x8xf32>
    %42 = arith.maximumf %40, %41 : vector<32x8xf32>
    %43 = vector.shape_cast %42 : vector<32x8xf32> to vector<2x16x8xf32>
    %cst_21 = arith.constant 0.000000e+00 : f32
    %44 = vector.broadcast %cst_21 : f32 to vector<2x1x8xf32>
    %45 = tpu.concatenate %44, %43, %44 in 1 : vector<2x1x8xf32>, vector<2x16x8xf32>, vector<2x1x8xf32> -> vector<2x18x8xf32>
    %46 = vector.extract_strided_slice %45 {offsets = [0, 0, 0], sizes = [2, 16, 8], strides = [1, 1, 1]} : vector<2x18x8xf32> to vector<2x16x8xf32>
    %47 = vector.shape_cast %46 : vector<2x16x8xf32> to vector<32x8xf32>
    %c0_22 = arith.constant 0 : index
    %c0_23 = arith.constant 0 : index
    %c0_24 = arith.constant 0 : index
    %48 = vector.load %arg4[%c0_22, %c0_23, %c0_24] : memref<3x8x8xf32, #tpu.memory_space<vmem>>, vector<1x8x8xf32>
    %49 = vector.shape_cast %48 : vector<1x8x8xf32> to vector<8x8xf32>
    %cst_25 = arith.constant dense<0.000000e+00> : vector<32x8xf32>
    %50 = tpu.matmul %47, %49, %cst_25 {dimension_numbers = #tpu.dot_dimension_numbers<[1], [0], [0], [1], [0, 0, 1, 1], [], []>} : vector<32x8xf32>, vector<8x8xf32>, vector<32x8xf32> -> vector<32x8xf32>
    %51 = vector.extract_strided_slice %45 {offsets = [0, 1, 0], sizes = [2, 16, 8], strides = [1, 1, 1]} : vector<2x18x8xf32> to vector<2x16x8xf32>
    %52 = vector.shape_cast %51 : vector<2x16x8xf32> to vector<32x8xf32>
    %c1_26 = arith.constant 1 : index
    %c0_27 = arith.constant 0 : index
    %c0_28 = arith.constant 0 : index
    %53 = vector.load %arg4[%c1_26, %c0_27, %c0_28] : memref<3x8x8xf32, #tpu.memory_space<vmem>>, vector<1x8x8xf32>
    %54 = vector.shape_cast %53 : vector<1x8x8xf32> to vector<8x8xf32>
    %cst_29 = arith.constant dense<0.000000e+00> : vector<32x8xf32>
    %55 = tpu.matmul %52, %54, %cst_29 {dimension_numbers = #tpu.dot_dimension_numbers<[1], [0], [0], [1], [0, 0, 1, 1], [], []>} : vector<32x8xf32>, vector<8x8xf32>, vector<32x8xf32> -> vector<32x8xf32>
    %56 = arith.addf %50, %55 : vector<32x8xf32>
    %57 = vector.extract_strided_slice %45 {offsets = [0, 2, 0], sizes = [2, 16, 8], strides = [1, 1, 1]} : vector<2x18x8xf32> to vector<2x16x8xf32>
    %58 = vector.shape_cast %57 : vector<2x16x8xf32> to vector<32x8xf32>
    %c2_30 = arith.constant 2 : index
    %c0_31 = arith.constant 0 : index
    %c0_32 = arith.constant 0 : index
    %59 = vector.load %arg4[%c2_30, %c0_31, %c0_32] : memref<3x8x8xf32, #tpu.memory_space<vmem>>, vector<1x8x8xf32>
    %60 = vector.shape_cast %59 : vector<1x8x8xf32> to vector<8x8xf32>
    %cst_33 = arith.constant dense<0.000000e+00> : vector<32x8xf32>
    %61 = tpu.matmul %58, %60, %cst_33 {dimension_numbers = #tpu.dot_dimension_numbers<[1], [0], [0], [1], [0, 0, 1, 1], [], []>} : vector<32x8xf32>, vector<8x8xf32>, vector<32x8xf32> -> vector<32x8xf32>
    %62 = arith.addf %56, %61 : vector<32x8xf32>
    %c0_34 = arith.constant 0 : index
    %c0_35 = arith.constant 0 : index
    %63 = vector.load %arg5[%c0_34, %c0_35] : memref<1x8xf32, #tpu.memory_space<vmem>>, vector<1x8xf32>
    %c0_36 = arith.constant 0 : index
    %c0_37 = arith.constant 0 : index
    %64 = vector.load %arg6[%c0_36, %c0_37] : memref<1x8xf32, #tpu.memory_space<vmem>>, vector<1x8xf32>
    %cst_38 = arith.constant dense<0.000000e+00> : vector<8xf32>
    %65 = vector.multi_reduction <add>, %62, %cst_38 [0] : vector<32x8xf32> to vector<8xf32>
    %66 = vector.shape_cast %65 : vector<8xf32> to vector<1x8xf32>
    %cst_39 = arith.constant 3.200000e+01 : f32
    %67 = vector.broadcast %cst_39 : f32 to vector<1x8xf32>
    %68 = arith.divf %66, %67 : vector<1x8xf32>
    %69 = vector.broadcast %68 : vector<1x8xf32> to vector<32x8xf32>
    %70 = arith.subf %62, %69 : vector<32x8xf32>
    %71 = arith.mulf %70, %70 : vector<32x8xf32>
    %cst_40 = arith.constant dense<0.000000e+00> : vector<8xf32>
    %72 = vector.multi_reduction <add>, %71, %cst_40 [0] : vector<32x8xf32> to vector<8xf32>
    %73 = vector.shape_cast %72 : vector<8xf32> to vector<1x8xf32>
    %cst_41 = arith.constant 3.200000e+01 : f32
    %74 = vector.broadcast %cst_41 : f32 to vector<1x8xf32>
    %75 = arith.divf %73, %74 : vector<1x8xf32>
    %cst_42 = arith.constant 9.99999974E-6 : f32
    %76 = vector.broadcast %cst_42 : f32 to vector<1x8xf32>
    %77 = arith.addf %75, %76 : vector<1x8xf32>
    %78 = math.rsqrt %77 : vector<1x8xf32>
    %79 = arith.mulf %63, %78 : vector<1x8xf32>
    %80 = arith.mulf %68, %79 : vector<1x8xf32>
    %81 = arith.subf %64, %80 : vector<1x8xf32>
    %82 = vector.broadcast %79 : vector<1x8xf32> to vector<32x8xf32>
    %83 = arith.mulf %62, %82 : vector<32x8xf32>
    %84 = vector.broadcast %81 : vector<1x8xf32> to vector<32x8xf32>
    %85 = arith.addf %83, %84 : vector<32x8xf32>
    %86 = vector.extract_strided_slice %0 {offsets = [0, 1, 0], sizes = [2, 16, 4], strides = [1, 1, 1]} : vector<2x18x4xf32> to vector<2x16x4xf32>
    %87 = vector.shape_cast %86 : vector<2x16x4xf32> to vector<32x4xf32>
    %c0_43 = arith.constant 0 : index
    %c0_44 = arith.constant 0 : index
    %88 = vector.load %arg7[%c0_43, %c0_44] : memref<4x8xf32, #tpu.memory_space<vmem>>, vector<4x8xf32>
    %cst_45 = arith.constant dense<0.000000e+00> : vector<32x8xf32>
    %89 = tpu.matmul %87, %88, %cst_45 {dimension_numbers = #tpu.dot_dimension_numbers<[1], [0], [0], [1], [0, 0, 1, 1], [], []>} : vector<32x4xf32>, vector<4x8xf32>, vector<32x8xf32> -> vector<32x8xf32>
    %c0_46 = arith.constant 0 : index
    %c0_47 = arith.constant 0 : index
    %90 = vector.load %arg8[%c0_46, %c0_47] : memref<1x8xf32, #tpu.memory_space<vmem>>, vector<1x8xf32>
    %91 = vector.broadcast %90 : vector<1x8xf32> to vector<32x8xf32>
    %92 = arith.addf %89, %91 : vector<32x8xf32>
    %93 = arith.addf %85, %92 : vector<32x8xf32>
    %cst_48 = arith.constant 0.000000e+00 : f32
    %94 = vector.broadcast %cst_48 : f32 to vector<32x8xf32>
    %95 = arith.maximumf %93, %94 : vector<32x8xf32>
    %96 = vector.shape_cast %95 : vector<32x8xf32> to vector<2x16x8xf32>
    %c0_49 = arith.constant 0 : index
    %c0_50 = arith.constant 0 : index
    %c0_51 = arith.constant 0 : index
    %97 = vector.load %arg9[%c0_49, %c0_50, %c0_51] : memref<2x16x8xf32, #tpu.memory_space<vmem>>, vector<2x16x8xf32>
    tpu.vector_store %arg9[%c0_49, %c0_50, %c0_51], %96 {strides = array<i32>} : memref<2x16x8xf32, #tpu.memory_space<vmem>>, vector<2x16x8xf32>,
    return
  }
}

</mosaic_0001>

<bundles_post_ra>
// kernel: tpu_custom_call.1
= control target key start
LH: loop header
LB: loop body
LE: loop exit
PB: predicated region body
PF: predicated region fallthrough
CT: control target
= control target key end

     0   :  { %14 = vsyncpa [#allocation3], 0  ;;  %s1737_s0 = inlined_call_operand.hbm [shape: f32[2,18,4], index: 0, kind: input, shape index: {}]   ;;  %s1738_s1 = inlined_call_operand.hbm [shape: f32[3,4,8], index: 1, kind: input, shape index: {}]   ;;  %s1739_s2 = inlined_call_operand.hbm [shape: f32[1,8], index: 2, kind: input, shape index: {}]   ;;  %s1740_s3 = inlined_call_operand.hbm [shape: f32[1,8], index: 3, kind: input, shape index: {}]   ;;  %s1741_s4 = inlined_call_operand.hbm [shape: f32[3,8,8], index: 4, kind: input, shape index: {}]   ;;  %s1742_s5 = inlined_call_operand.hbm [shape: f32[1,8], index: 5, kind: input, shape index: {}]   ;;  %s1743_s6 = inlined_call_operand.hbm [shape: f32[1,8], index: 6, kind: input, shape index: {}]   ;;  %s1744_s7 = inlined_call_operand.hbm [shape: f32[4,8], index: 7, kind: input, shape index: {}]   ;;  %s1745_s8 = inlined_call_operand.hbm [shape: f32[1,8], index: 8, kind: input, shape index: {}]   ;;  %s1746_s9 = inlined_call_operand.hbm [shape: f32[2,16,8], index: 9, kind: output, shape index: {}]  }
   0x1   :  { %15 = vsyncpa [#allocation6], 0 }
   0x2   :  { %16 = vsyncpa [#allocation9], 0 }
   0x3   :  { %17 = vsyncpa [#allocation12], 0 }
   0x4   :  { %18 = vsyncpa [#allocation15], 0 }
   0x5   :  { %19 = vsyncpa [#allocation4], 0  ;;  %s1460_s30 = smov [#allocation5]   ;;  %s1228_s13 = scalar_lea.hbm %s1738_s1, 192 }
   0x6   :  { %s37_s10 = sshll.u32 %s1460_s30, 4  ;;  %p1229_p0 = scmp.ne.s32.totalorder %s1738_s1, %s1228_s13  ;;  %s38_s10 = int_to_ptr.vmem [resolvable:$true] %s37_s10 }
   0x7   :  { %p1232_p1 = scmp.lt.u32.totalorder %s1228_s13, %s1738_s1 }
   0x9   :  { %p1234_p2 = pnand %p1232_p1, %p1229_p0 }
   0xb   :  { %1237 = shalt.err (!%p1234_p2)
}
   0xc   :  { %s1238_s18 = scalar_lea.vmem %s38_s10, 192  ;;  %p1243_p4 = scmp.lt.s32.totalorder %s38_s10, %s38_s10 }
   0xd   :  { %p1239_p3 = scmp.ne.s32.totalorder %s38_s10, %s1238_s18  ;;  %p1244_p5 = scmp.lt.s32.totalorder %s1238_s18, %s1238_s18 }
   0xf   :  { %p1245_p6 = por %p1244_p5, %p1243_p4 }
  0x11   :  { %p1246_p7 = pnand %p1245_p6, %p1239_p3 }
  0x13   :  { %1249 = shalt.err (!%p1246_p7)
}
  0x14   :  { %s1461_s19 = smov 64   ;;  %s1462_s20 = smov 4  }
  0x15   :  { %43 = dma.hbm_to_vmem [thread:$0]  %s1738_s1, 192, %s38_s10, [#allocation6], %s1461_s19, %s1461_s19, %s1462_s20  }
  0x16   :  { %s1463_s23 = smov [#allocation8]   ;;  %s1464_s25 = smov [#allocation11]  }
  0x17   :  { %s60_s24 = sshll.u32 %s1463_s23, 4  ;;  %s82_s26 = sshll.u32 %s1464_s25, 4  ;;  %s61_s24 = int_to_ptr.vmem [resolvable:$true] %s60_s24  ;;  %s83_s26 = int_to_ptr.vmem [resolvable:$true] %s82_s26 }
  0x18   :  { %s1250_s29 = scalar_lea.hbm %s1740_s3, 16 }
  0x19   :  { %p1251_p8 = scmp.ne.s32.totalorder %s1740_s3, %s1250_s29  ;;  %p1254_p9 = scmp.lt.u32.totalorder %s1250_s29, %s1740_s3 }
  0x1b   :  { %p1256_p10 = pnand %p1254_p9, %p1251_p8 }
  0x1d   :  { %1259 = shalt.err (!%p1256_p10)
}
  0x1e   :  { %s1260_s1 = scalar_lea.vmem %s61_s24, 16  ;;  %s1264_s10 = scalar_lea.vmem %s61_s24, 32 }
  0x1f   :  { %p1261_p11 = scmp.ne.s32.totalorder %s61_s24, %s1260_s1  ;;  %p1265_p12 = scmp.lt.s32.totalorder %s61_s24, %s61_s24 }
  0x20   :  { %p1266_p13 = scmp.lt.s32.totalorder %s1264_s10, %s1260_s1 }
  0x22   :  { %p1267_p0 = por %p1266_p13, %p1265_p12 }
  0x24   :  { %p1268_p1 = pnand %p1267_p0, %p1261_p11 }
  0x26   :  { %1271 = shalt.err (!%p1268_p1)
}
  0x27   :  { %63 = dma.hbm_to_vmem [thread:$0]  %s1740_s3, 16, %s61_s24, [#allocation9]  }
  0x28   :  { %s1272_s18 = scalar_lea.hbm %s1742_s5, 16 }
  0x29   :  { %p1273_p2 = scmp.ne.s32.totalorder %s1742_s5, %s1272_s18  ;;  %p1276_p3 = scmp.lt.u32.totalorder %s1272_s18, %s1742_s5 }
  0x2b   :  { %p1278_p4 = pnand %p1276_p3, %p1273_p2 }
  0x2d   :  { %1281 = shalt.err (!%p1278_p4)
}
  0x2e   :  { %s1282_s23 = scalar_lea.vmem %s83_s26, 16  ;;  %s1286_s25 = scalar_lea.vmem %s83_s26, 32 }
  0x2f   :  { %p1283_p5 = scmp.ne.s32.totalorder %s83_s26, %s1282_s23  ;;  %p1287_p6 = scmp.lt.s32.totalorder %s83_s26, %s83_s26 }
  0x30   :  { %p1288_p7 = scmp.lt.s32.totalorder %s1286_s25, %s1282_s23 }
  0x32   :  { %p1289_p8 = por %p1288_p7, %p1287_p6 }
  0x34   :  { %p1290_p9 = pnand %p1289_p8, %p1283_p5 }
  0x36   :  { %1293 = shalt.err (!%p1290_p9)
}
  0x37   :  { %85 = dma.hbm_to_vmem [thread:$0]  %s1742_s5, 16, %s83_s26, [#allocation12]  }
  0x38   :  { %s1465_s27 = smov [#allocation14]   ;;  %s1466_s29 = smov [#allocation2]  }
  0x39   :  { %s102_s28 = sshll.u32 %s1465_s27, 4  ;;  %s25_s30 = sshll.u32 %s1466_s29, 4  ;;  %s103_s28 = int_to_ptr.vmem [resolvable:$true] %s102_s28  ;;  %s26_s30 = int_to_ptr.vmem [resolvable:$true] %s25_s30 }
  0x3a   :  { %s1294_s13 = scalar_lea.hbm %s1744_s7, 64 }
  0x3b   :  { %p1295_p10 = scmp.ne.s32.totalorder %s1744_s7, %s1294_s13  ;;  %p1298_p11 = scmp.lt.u32.totalorder %s1294_s13, %s1744_s7 }
  0x3d   :  { %p1300_p12 = pnand %p1298_p11, %p1295_p10 }
  0x3f   :  { %1303 = shalt.err (!%p1300_p12)
}
  0x40   :  { %s1304_s5 = scalar_lea.vmem %s103_s28, 64  ;;  %p1309_p0 = scmp.lt.s32.totalorder %s103_s28, %s103_s28 }
  0x41   :  { %p1305_p13 = scmp.ne.s32.totalorder %s103_s28, %s1304_s5  ;;  %p1310_p1 = scmp.lt.s32.totalorder %s1304_s5, %s1304_s5 }
  0x43   :  { %p1311_p2 = por %p1310_p1, %p1309_p0 }
  0x45   :  { %p1312_p3 = pnand %p1311_p2, %p1305_p13 }
  0x47   :  { %1315 = shalt.err (!%p1312_p3)
}
  0x48   :  { %105 = dma.hbm_to_vmem [thread:$0]  %s1744_s7, 64, %s103_s28, [#allocation15]  }
  0x49   :  { %s1316_s19 = scalar_lea.hbm %s1737_s0, 768 }
  0x4a   :  { %p1317_p4 = scmp.ne.s32.totalorder %s1737_s0, %s1316_s19  ;;  %p1320_p5 = scmp.lt.u32.totalorder %s1316_s19, %s1737_s0 }
  0x4c   :  { %p1322_p6 = pnand %p1320_p5, %p1317_p4 }
  0x4e   :  { %1325 = shalt.err (!%p1322_p6)
}
  0x4f   :  { %s1326_s25 = scalar_lea.vmem %s26_s30, 768  ;;  %p1331_p8 = scmp.lt.s32.totalorder %s26_s30, %s26_s30 }
  0x50   :  { %p1327_p7 = scmp.ne.s32.totalorder %s26_s30, %s1326_s25  ;;  %p1332_p9 = scmp.lt.s32.totalorder %s1326_s25, %s1326_s25 }
  0x52   :  { %p1333_p10 = por %p1332_p9, %p1331_p8 }
  0x54   :  { %p1334_p11 = pnand %p1333_p10, %p1327_p7 }
  0x56   :  { %1337 = shalt.err (!%p1334_p11)
}
  0x57   :  { %s1467_s7 = smov 128   ;;  %s1468_s3 = smov 8  }
  0x58   :  { %31 = dma.hbm_to_vmem [thread:$0]  %s1737_s0, 768, %s26_s30, [#allocation3], %s1467_s7, %s1467_s7, %s1468_s3  }
  0x59   :  { %s1469_s28 = smov [#allocation7]   ;;  %s1470_s11 = smov [#allocation10]  }
  0x5a   :  { %s50_s29 = sshll.u32 %s1469_s28, 4  ;;  %s69_s12 = sshll.u32 %s1470_s11, 4  ;;  %s51_s29 = int_to_ptr.vmem [resolvable:$true] %s50_s29  ;;  %s70_s12 = int_to_ptr.vmem [resolvable:$true] %s69_s12 }
  0x5b   :  { %s1338_s10 = scalar_lea.hbm %s1739_s2, 16 }
  0x5c   :  { %p1339_p12 = scmp.ne.s32.totalorder %s1739_s2, %s1338_s10  ;;  %p1342_p13 = scmp.lt.u32.totalorder %s1338_s10, %s1739_s2 }
  0x5e   :  { %p1344_p0 = pnand %p1342_p13, %p1339_p12 }
  0x60   :  { %1347 = shalt.err (!%p1344_p0)
}
  0x61   :  { %s1348_s0 = scalar_lea.vmem %s51_s29, 16  ;;  %s1352_s30 = scalar_lea.vmem %s51_s29, 32 }
  0x62   :  { %p1349_p1 = scmp.ne.s32.totalorder %s51_s29, %s1348_s0  ;;  %p1353_p2 = scmp.lt.s32.totalorder %s51_s29, %s51_s29 }
  0x63   :  { %p1354_p3 = scmp.lt.s32.totalorder %s1352_s30, %s1348_s0 }
  0x65   :  { %p1355_p4 = por %p1354_p3, %p1353_p2 }
  0x67   :  { %p1356_p5 = pnand %p1355_p4, %p1349_p1 }
  0x69   :  { %1359 = shalt.err (!%p1356_p5)
}
  0x6a   :  { %53 = dma.hbm_to_vmem [thread:$0]  %s1739_s2, 16, %s51_s29, [#allocation6]  }
  0x6b   :  { %s1360_s20 = scalar_lea.hbm %s1741_s4, 384 }
  0x6c   :  { %p1361_p6 = scmp.ne.s32.totalorder %s1741_s4, %s1360_s20  ;;  %p1364_p7 = scmp.lt.u32.totalorder %s1360_s20, %s1741_s4 }
  0x6e   :  { %p1366_p8 = pnand %p1364_p7, %p1361_p6 }
  0x70   :  { %1369 = shalt.err (!%p1366_p8)
}
  0x71   :  { %s1370_s24 = scalar_lea.vmem %s70_s12, 384  ;;  %p1375_p10 = scmp.lt.s32.totalorder %s70_s12, %s70_s12 }
  0x72   :  { %p1371_p9 = scmp.ne.s32.totalorder %s70_s12, %s1370_s24  ;;  %p1376_p11 = scmp.lt.s32.totalorder %s1370_s24, %s1370_s24 }
  0x74   :  { %p1377_p12 = por %p1376_p11, %p1375_p10 }
  0x76   :  { %p1378_p13 = pnand %p1377_p12, %p1371_p9 }
  0x78   :  { %1381 = shalt.err (!%p1378_p13)
}
  0x79   :  { %75 = dma.hbm_to_vmem [thread:$0]  %s1741_s4, 384, %s70_s12, [#allocation9], %s1467_s7, %s1467_s7, %s1468_s3  }
  0x7a   :  { %s1471_s28 = smov [#allocation13]   ;;  %s1472_s11 = smov [#allocation16]  }
  0x7b   :  { %s92_s29 = sshll.u32 %s1471_s28, 4  ;;  %s112_s13 = sshll.u32 %s1472_s11, 4  ;;  %s93_s29 = int_to_ptr.vmem [resolvable:$true] %s92_s29  ;;  %s113_s13 = int_to_ptr.vmem [resolvable:$true] %s112_s13 }
  0x7c   :  { %s1382_s14 = scalar_lea.hbm %s1743_s6, 16 }
  0x7d   :  { %p1383_p0 = scmp.ne.s32.totalorder %s1743_s6, %s1382_s14  ;;  %p1386_p1 = scmp.lt.u32.totalorder %s1382_s14, %s1743_s6 }
  0x7f   :  { %p1388_p2 = pnand %p1386_p1, %p1383_p0 }
  0x81   :  { %1391 = shalt.err (!%p1388_p2)
}
  0x82   :  { %s1392_s4 = scalar_lea.vmem %s93_s29, 16  ;;  %s1396_s12 = scalar_lea.vmem %s93_s29, 32 }
  0x83   :  { %p1393_p3 = scmp.ne.s32.totalorder %s93_s29, %s1392_s4  ;;  %p1397_p4 = scmp.lt.s32.totalorder %s93_s29, %s93_s29 }
  0x84   :  { %p1398_p5 = scmp.lt.s32.totalorder %s1396_s12, %s1392_s4 }
  0x86   :  { %p1399_p6 = por %p1398_p5, %p1397_p4 }
  0x88   :  { %p1400_p7 = pnand %p1399_p6, %p1393_p3 }
  0x8a   :  { %1403 = shalt.err (!%p1400_p7)
}
  0x8b   :  { %95 = dma.hbm_to_vmem [thread:$0]  %s1743_s6, 16, %s93_s29, [#allocation12]  }
  0x8c   :  { %s1404_s19 = scalar_lea.hbm %s1745_s8, 16 }
  0x8d   :  { %p1405_p8 = scmp.ne.s32.totalorder %s1745_s8, %s1404_s19  ;;  %p1408_p9 = scmp.lt.u32.totalorder %s1404_s19, %s1745_s8 }
  0x8f   :  { %p1410_p10 = pnand %p1408_p9, %p1405_p8 }
  0x91   :  { %1413 = shalt.err (!%p1410_p10)
}
  0x92   :  { %s1414_s25 = scalar_lea.vmem %s113_s13, 16  ;;  %s1418_s24 = scalar_lea.vmem %s113_s13, 32 }
  0x93   :  { %p1415_p11 = scmp.ne.s32.totalorder %s113_s13, %s1414_s25  ;;  %p1419_p12 = scmp.lt.s32.totalorder %s113_s13, %s113_s13 }
  0x94   :  { %p1420_p13 = scmp.lt.s32.totalorder %s1418_s24, %s1414_s25 }
  0x96   :  { %p1421_p0 = por %p1420_p13, %p1419_p12 }
  0x98   :  { %p1422_p1 = pnand %p1421_p0, %p1415_p11 }
  0x9a   :  { %1425 = shalt.err (!%p1422_p1)
}
  0x9b   :  { %115 = dma.hbm_to_vmem [thread:$0]  %s1745_s8, 16, %s113_s13, [#allocation15]  }
  0x9c   :  { %1448 = dma.done.wait [#allocation3], 768  }
  0x9d   :  { %1449 = vsyncadd [#allocation3], 4294966528 }
  0x9e   :  { %1450 = dma.done.wait [#allocation6], 208  }
  0x9f   :  { %1451 = vsyncadd [#allocation6], 4294967088 }
  0xa0   :  { %1452 = dma.done.wait [#allocation9], 400  }
  0xa1   :  { %1453 = vsyncadd [#allocation9], 4294966896 }
  0xa2   :  { %1454 = dma.done.wait [#allocation12], 32  }
  0xa3   :  { %1455 = vsyncadd [#allocation12], 4294967264 }
  0xa4   :  { %1456 = dma.done.wait [#allocation15], 80  }
  0xa5   :  { %1457 = vsyncadd [#allocation15], 4294967216  ;;  %vm178_vm0 = vcmask 1043456   ;;  %v168_v0 = vld [vmem:[#allocation5 + $0x4] sm:$0xf]  ;;  %v143_v1 = vld [vmem:[#allocation2] sm:$0xff] }
  0xa6   :  { %v144_v2 = vld [vmem:[#allocation2 + $0x8] sm:$0xff]  ;;  %vm156_vm1 = vcmask 1046528   ;;  %vm169_vm2 = vcmask 31744   ;;  %1136 = vmatprep.subr.msk.mxu0 %vm178_vm0, %v168_v0  ;;  %v157_v3 = vrot.slane %v143_v1, 1  ;;  %v149_v5 = vld [vmem:[#allocation5] sm:$0xf]  ;;  %1192 = vmatprep.subr.msk.mxu1 %vm178_vm0, %v168_v0 }
  0xa7   :  { %v158_v4 = vrot.slane %v144_v2, 1  ;;  %v145_v6 = vld [vmem:[#allocation2 + $0x10] sm:$0x3]  ;;  %1137 = vmatpush3.msk.msra.mxu0 %vm178_vm0, %v168_v0  ;;  %1193 = vmatpush3.msk.msra.mxu1 %vm178_vm0, %v168_v0  ;;  %v146_v9 = vld [vmem:[#allocation2 + $0x18] sm:$0xff]  ;;  %v147_v10 = vld [vmem:[#allocation2 + $0x20] sm:$0xff]  ;;  %v364_v19 = vrot.slane %v143_v1, 2 }
  0xa8   :  { %v160_v7 = vrot.slane %v145_v6, 1  ;;  %1144 = vmatprep.subr.msk.mxu0 %vm178_vm0, %v149_v5  ;;  %v148_v11 = vld [vmem:[#allocation2 + $0x28] sm:$0x3]  ;;  %v375_v13 = vld [vmem:[#allocation5 + $0x8] sm:$0xf]  ;;  %v162_v14 = vrot.slane %v146_v9, 1 }
  0xa9   :  { %v159_v8 = vsel %vm156_vm1, %v157_v3, %v158_v4  ;;  %v163_v15 = vrot.slane %v147_v10, 1  ;;  %v165_v16 = vrot.slane %v148_v11, 1  ;;  %v365_v20 = vrot.slane %v144_v2, 2  ;;  %v580_v29 = vld [vmem:[#allocation10 + $0x8] sm:$0xff]  ;;  %v1667_v30 = vld [vmem:[#allocation10] sm:$0xff]  ;;  %s1473_s8 = smov [#allocation17]  }
  0xaa   :  { %1138 = vmatprep.mubr.msk.f32.mxu0 %vm169_vm2, %v159_v8  ;;  %v161_v12 = vsel %vm156_vm1, %v158_v4, %v160_v7  ;;  %vm363_vm3 = vcmask 1045504   ;;  %v367_v21 = vrot.slane %v145_v6, 2  ;;  %v369_v22 = vrot.slane %v146_v9, 2  ;;  %1160 = vmatprep.subr.mxu1 %v580_v29  ;;  %v939_v31 = vld [vmem:[#allocation14] sm:$0xf]  ;;  %s1052_s27 = sshll.u32 %s1473_s8, 4  ;;  %s1053_s27 = int_to_ptr.vmem [resolvable:$true] %s1052_s27 }
  0xab   :  { %1139 = vmatmul.mubr.msk.f32.vlgmr.msra.gmra.mrb[0].mxu0 %vm169_vm2, %v161_v12  ;;  %v164_v17 = vsel %vm156_vm1, %v162_v14, %v163_v15  ;;  %v166_v18 = vsel %vm156_vm1, %v163_v15, %v165_v16  ;;  %v370_v23 = vrot.slane %v147_v10, 2  ;;  %v366_v24 = vsel %vm363_vm3, %v364_v19, %v365_v20  ;;  %v476_v15 = vld [vmem:[#allocation7] sm:$0x1]  ;;  %v477_v19 = vld [vmem:[#allocation8] sm:$0x1]  ;;  %s1426_s28 = scalar_lea.vmem %s1053_s27, 512  ;;  %p1431_p3 = scmp.lt.s32.totalorder %s1053_s27, %s1053_s27 }
  0xac   :  { %1145 = vmatpush3.msk.msra.mxu0 %vm178_vm0, %v149_v5  ;;  %1146 = vmatprep.mubr.msk.f32.mxu0 %vm169_vm2, %v143_v1  ;;  %v368_v25 = vsel %vm363_vm3, %v365_v20, %v367_v21  ;;  %v372_v26 = vrot.slane %v148_v11, 2  ;;  %vm478_vm4 = vcmask 64512   ;;  %vm549_vm5 = vcmask 1040384   ;;  %p1427_p2 = scmp.ne.s32.totalorder %s1053_s27, %s1426_s28  ;;  %p1432_p4 = scmp.lt.s32.totalorder %s1426_s28, %s1426_s28 }
  0xad   :  { %1152 = vmatprep.subr.msk.mxu0 %vm178_vm0, %v375_v13  ;;  %1141 = vmatprep.mubr.msk.f32.mxu1 %vm169_vm2, %v164_v17  ;;  %v371_v27 = vsel %vm363_vm3, %v369_v22, %v370_v23 }
  0xae   :  { %1142 = vmatmul.mubr.msk.f32.vlgmr.msra.gmra.mrb[0].mxu1 %vm169_vm2, %v166_v18  ;;  %v373_v28 = vsel %vm363_vm3, %v370_v23, %v372_v26  ;;  %p1433_p5 = por %p1432_p4, %p1431_p3 }
  0xaf   :  { %1161 = vmatpush3.msra.mxu1 %v580_v29 }
  0xb0   :  { %1168 = vmatprep.subr.mxu1 %v1667_v30  ;;  %p1434_p6 = pnand %p1433_p5, %p1427_p2 }
  0xb3   :  { %1147 = vmatmul.mubr.msk.f32.vlgmr.msra.gmra.mrb[0].mxu0 %vm169_vm2, %v144_v2 }
  0xb4   :  { %1153 = vmatpush3.msk.msra.mxu0 %vm178_vm0, %v375_v13  ;;  %1149 = vmatprep.mubr.msk.f32.mxu0 %vm169_vm2, %v146_v9  ;;  %v522_v13 = vlaneseq }
  0xb5   :  { %1184 = vmatprep.subr.msk.mxu0 %vm178_vm0, %v939_v31 }
  0xb6   :  { %v523_v14 = vshrl.u32 %v522_v13, 7 }
  0xb7   :  { %1150 = vmatmul.mubr.msk.f32.gmra.mrb[2].mxu0 %vm169_vm2, %v147_v10 }
  0xb8   :  { %1154 = vmatprep.mubr.msk.f32.mxu0 %vm169_vm2, %v366_v24  ;;  %v1683_v16 = vsub.s32 0, %v523_v14 }
  0xbb   :  { %1155 = vmatmul.mubr.msk.f32.vlgmr.msra.gmra.mrb[0].mxu0 %vm169_vm2, %v368_v25 }
  0xbc   :  { %1157 = vmatprep.mubr.msk.f32.mxu0 %vm169_vm2, %v371_v27  ;;  %1185 = vmatpush3.msk.msra.mxu0 %vm178_vm0, %v939_v31 }
  0xbf   :  { %1158 = vmatmul.mubr.msk.f32.gmra.mrb[2].mxu0 %vm169_vm2, %v373_v28 }
  0xc0   :  { %1186 = vmatprep.mubr.msk.f32.mxu0 %vm169_vm2, %v159_v8 }
  0xc3   :  { %1187 = vmatmul.mubr.msk.f32.vlgmr.msra.gmra.mrb[4].mxu0 %vm169_vm2, %v161_v12 }
  0xc4   :  { %1189 = vmatprep.mubr.msk.f32.mxu0 %vm169_vm2, %v164_v17 }
  0xc7   :  { %1190 = vmatmul.mubr.msk.f32.gmra.mrb[6].mxu0 %vm169_vm2, %v166_v18 }
 0x181   :  { %v1143_v32 = vpop.f32.mrb[0].mxu1 }
 0x182   :  { %v258_v33 = vpop.f32.mrb[1].mxu1 }
 0x18e   :  { %v1156_v34 = vpop.f32.mrb[0].mxu0 }
 0x18f   :  { %v480_v35 = vsel %vm478_vm4, %v1156_v34, 0.0  ;;  %v453_v36 = vpop.f32.mrb[1].mxu0 }
 0x190   :  { %v479_v37 = vsel %vm478_vm4, %v453_v36, 0.0 }
 0x191   :  { %v481_v38 = vadd.f32 %v480_v35, %v479_v37 }
 0x192   :  { %v1159_v39 = vpop.f32.mrb[2].mxu0 }
 0x193   :  { %v1194_v40 = vadd.f32 %v1159_v39, %v1143_v32  ;;  %v463_v41 = vpop.f32.mrb[3].mxu0 }
 0x194   :  { %v1195_v42 = vadd.f32 %v463_v41, %v258_v33 }
 0x195   :  { %v484_v45 = vsel %vm478_vm4, %v1194_v40, 0.0 }
 0x196   :  { %v482_v43 = vsel %vm478_vm4, %v1195_v42, 0.0 }
 0x197   :  { %v483_v44 = vadd.f32 %v482_v43, %v481_v38 }
 0x199   :  { %v485_v46 = vadd.f32 %v484_v45, %v483_v44 }
 0x19b   :  { %v486_v47 = vrot.slane %v485_v46, 4 }
 0x19d   :  { %v487_v48 = vadd.f32 %v486_v47, %v485_v46 }
 0x19f   :  { %v488_v49 = vrot.slane %v487_v48, 2 }
 0x1a1   :  { %v489_v50 = vadd.f32 %v488_v49, %v487_v48 }
 0x1a3   :  { %v490_v51 = vrot.slane %v489_v50, 1 }
 0x1a5   :  { %v491_v52 = vadd.f32 %v490_v51, %v489_v50 }
 0x1a7   :  { %v493_v53 = vmul.f32 0.03125, %v491_v52 }
 0x1a9   :  { %v494_v54 = vsub.f32 %v453_v36, %v493_v53  ;;  %v495_v55 = vsub.f32 %v1156_v34, %v493_v53  ;;  %v496_v56 = vsub.f32 %v1195_v42, %v493_v53  ;;  %v497_v57 = vsub.f32 %v1194_v40, %v493_v53 }
 0x1ab   :  { %v498_v58 = vmul.f32 %v494_v54, %v494_v54  ;;  %v499_v59 = vmul.f32 %v495_v55, %v495_v55  ;;  %v500_v60 = vmul.f32 %v496_v56, %v496_v56  ;;  %v501_v61 = vmul.f32 %v497_v57, %v497_v57  ;;  %v778_v57 = vld [vmem:[#allocation10 + $0x10] sm:$0xff] }
 0x1ad   :  { %v502_v62 = vsel %vm478_vm4, %v498_v58, 0.0  ;;  %v503_v63 = vsel %vm478_vm4, %v499_v59, 0.0  ;;  %v505_v1 = vsel %vm478_vm4, %v500_v60, 0.0  ;;  %v507_v3 = vsel %vm478_vm4, %v501_v61, 0.0 }
 0x1ae   :  { %v504_v0 = vadd.f32 %v503_v63, %v502_v62 }
 0x1b0   :  { %v506_v2 = vadd.f32 %v505_v1, %v504_v0 }
 0x1b2   :  { %v508_v4 = vadd.f32 %v507_v3, %v506_v2 }
 0x1b4   :  { %v509_v5 = vrot.slane %v508_v4, 4 }
 0x1b6   :  { %v510_v6 = vadd.f32 %v509_v5, %v508_v4 }
 0x1b8   :  { %v511_v7 = vrot.slane %v510_v6, 2 }
 0x1ba   :  { %v512_v8 = vadd.f32 %v511_v7, %v510_v6 }
 0x1bc   :  { %v513_v9 = vrot.slane %v512_v8, 1 }
 0x1be   :  { %v514_v10 = vadd.f32 %v513_v9, %v512_v8 }
 0x1c0   :  { %v515_v11 = vmul.f32 0.03125, %v514_v10 }
 0x1c2   :  { %v516_v12 = vadd.f32 1e-05, %v515_v11 }
 0x1c4   :  { %1224 = vrsqrt.f32 %v516_v12 }
 0x1ce   :  { %v1225_v17 = vpop.eup %1224 }
 0x1cf   :  { %v518_v18 = vmul.f32 %v1225_v17, %v476_v15 }
 0x1d1   :  { %v519_v20 = vmul.f32 %v518_v18, %v493_v53  ;;  %v525_v21 = vrot.slane %v518_v18, %v1683_v16 }
 0x1d3   :  { %v520_v22 = vsub.f32 %v477_v19, %v519_v20  ;;  %v529_v23 = vmul.f32 %v1195_v42, %v525_v21  ;;  %v527_v24 = vmul.f32 %v525_v21, %v453_v36  ;;  %v528_v25 = vmul.f32 %v1156_v34, %v525_v21 }
 0x1d4   :  { %v530_v26 = vmul.f32 %v1194_v40, %v525_v21 }
 0x1d5   :  { %v535_v27 = vrot.slane %v520_v22, %v1683_v16 }
 0x1d7   :  { %v539_v28 = vadd.f32 %v535_v27, %v529_v23  ;;  %v537_v29 = vadd.f32 %v535_v27, %v527_v24  ;;  %v538_v31 = vadd.f32 %v535_v27, %v528_v25  ;;  %v540_v32 = vadd.f32 %v535_v27, %v530_v26 }
 0x1d9   :  { %v543_v33 = vmax.f32 %v539_v28, 0.0  ;;  %v541_v35 = vmax.f32 %v537_v29, 0.0  ;;  %v542_v37 = vmax.f32 %v538_v31, 0.0  ;;  %v544_v38 = vmax.f32 %v540_v32, 0.0 }
 0x1db   :  { %v553_v39 = vrot.slane %v543_v33, 7  ;;  %v550_v41 = vrot.slane %v541_v35, 7  ;;  %v551_v43 = vrot.slane %v542_v37, 7  ;;  %v554_v44 = vrot.slane %v544_v38, 7 }
 0x1dd   :  { %v561_v45 = vsel %vm549_vm5, 0.0, %v553_v39  ;;  %v552_v42 = vsel %vm549_vm5, %v550_v41, %v551_v43  ;;  %v560_v36 = vsel %vm549_vm5, 0.0, %v550_v41  ;;  %v562_v34 = vsel %vm549_vm5, %v551_v43, 0.0 }
 0x1de   :  { %v569_v40 = vrot.slane %v560_v36, 1  ;;  %v570_v46 = vrot.slane %v552_v42, 1  ;;  %v572_v47 = vrot.slane %v562_v34, 1  ;;  %v770_v48 = vrot.slane %v562_v34, 2 }
 0x1df   :  { %v555_v49 = vsel %vm549_vm5, %v553_v39, %v554_v44  ;;  %v574_v50 = vrot.slane %v561_v45, 1  ;;  %v563_v51 = vsel %vm549_vm5, %v554_v44, 0.0  ;;  %v767_v52 = vrot.slane %v560_v36, 2 }
 0x1e0   :  { %v571_v53 = vsel %vm156_vm1, %v569_v40, %v570_v46  ;;  %v573_v54 = vsel %vm156_vm1, %v570_v46, %v572_v47  ;;  %v575_v55 = vrot.slane %v555_v49, 1  ;;  %v577_v56 = vrot.slane %v563_v51, 1 }
 0x1e1   :  { %1162 = vmatprep.mubr.msk.f32.mxu1 %vm478_vm4, %v571_v53  ;;  %v768_v58 = vrot.slane %v552_v42, 2  ;;  %v772_v59 = vrot.slane %v561_v45, 2  ;;  %v773_v60 = vrot.slane %v555_v49, 2  ;;  %v775_v61 = vrot.slane %v563_v51, 2  ;;  %v877_v53 = vld [vmem:[#allocation13] sm:$0x1] }
 0x1e2   :  { %1163 = vmatmul.mubr.msk.f32.vlgmr.msra.gmra.mrb[2].mxu1 %vm478_vm4, %v573_v54  ;;  %v576_v62 = vsel %vm156_vm1, %v574_v50, %v575_v55  ;;  %v578_v63 = vsel %vm156_vm1, %v575_v55, %v577_v56  ;;  %v876_v50 = vld [vmem:[#allocation11] sm:$0x1] }
 0x1e3   :  { %1169 = vmatpush3.msra.mxu1 %v1667_v30  ;;  %1165 = vmatprep.mubr.msk.f32.mxu1 %vm478_vm4, %v576_v62  ;;  %v769_v0 = vsel %vm363_vm3, %v767_v52, %v768_v58  ;;  %v771_v1 = vsel %vm363_vm3, %v768_v58, %v770_v48  ;;  %v774_v2 = vsel %vm363_vm3, %v772_v59, %v773_v60  ;;  %v1188_v30 = vpop.f32.mrb[4].mxu0  ;;  %v1095_v59 = vld [vmem:[#allocation16] ss:$0 sm:$0xff] }
 0x1e4   :  { %1176 = vmatprep.subr.mxu1 %v778_v57  ;;  %v776_v3 = vsel %vm363_vm3, %v773_v60, %v775_v61  ;;  %v1016_v4 = vpop.f32.mrb[5].mxu0 }
 0x1e5   :  { %v1191_v5 = vpop.f32.mrb[6].mxu0 }
 0x1e6   :  { %1166 = vmatmul.mubr.msk.f32.gmra.mrb[4].mxu1 %vm478_vm4, %v578_v63  ;;  %v1026_v6 = vpop.f32.mrb[7].mxu0  ;;  %v1032_v63 = vadd.f32 %v1191_v5, %v1095_v59 }
 0x1e7   :  { %1170 = vmatprep.mubr.msk.f32.mxu1 %vm478_vm4, %v560_v36 }
 0x1ea   :  { %1171 = vmatmul.mubr.msk.f32.vlgmr.msra.gmra.mrb[2].mxu1 %vm478_vm4, %v552_v42 }
 0x1eb   :  { %1177 = vmatpush3.msra.mxu1 %v778_v57  ;;  %1173 = vmatprep.mubr.msk.f32.mxu1 %vm478_vm4, %v561_v45 }
 0x1ee   :  { %1174 = vmatmul.mubr.msk.f32.gmra.mrb[4].mxu1 %vm478_vm4, %v555_v49 }
 0x1ef   :  { %1178 = vmatprep.mubr.msk.f32.mxu1 %vm478_vm4, %v769_v0  ;;  %v1027_v0 = vadd.f32 %v1095_v59, %v1026_v6 }
 0x1f2   :  { %1179 = vmatmul.mubr.msk.f32.vlgmr.msra.gmra.mrb[2].mxu1 %vm478_vm4, %v771_v1  ;;  %v1022_v1 = vadd.f32 %v1188_v30, %v1095_v59 }
 0x1f3   :  { %1181 = vmatprep.mubr.msk.f32.mxu1 %vm478_vm4, %v774_v2  ;;  %v1017_v2 = vadd.f32 %v1095_v59, %v1016_v4 }
 0x1f6   :  { %1182 = vmatmul.mubr.msk.f32.gmra.mrb[4].mxu1 %vm478_vm4, %v776_v3 }
 0x2c5   :  { %v1180_v7 = vpop.f32.mrb[2].mxu1 }
 0x2c6   :  { %v879_v8 = vsel %vm478_vm4, %v1180_v7, 0.0  ;;  %v853_v9 = vpop.f32.mrb[3].mxu1 }
 0x2c7   :  { %v878_v10 = vsel %vm478_vm4, %v853_v9, 0.0 }
 0x2c8   :  { %v880_v11 = vadd.f32 %v879_v8, %v878_v10 }
 0x2c9   :  { %v1183_v12 = vpop.f32.mrb[4].mxu1 }
 0x2ca   :  { %v863_v13 = vpop.f32.mrb[5].mxu1  ;;  %v883_v17 = vsel %vm478_vm4, %v1183_v12, 0.0 }
 0x2cb   :  { %v881_v14 = vsel %vm478_vm4, %v863_v13, 0.0 }
 0x2cc   :  { %v882_v15 = vadd.f32 %v881_v14, %v880_v11 }
 0x2ce   :  { %v884_v18 = vadd.f32 %v883_v17, %v882_v15 }
 0x2d0   :  { %v885_v19 = vrot.slane %v884_v18, 4 }
 0x2d2   :  { %v886_v20 = vadd.f32 %v885_v19, %v884_v18 }
 0x2d4   :  { %v887_v21 = vrot.slane %v886_v20, 2 }
 0x2d6   :  { %v888_v22 = vadd.f32 %v887_v21, %v886_v20 }
 0x2d8   :  { %v889_v23 = vrot.slane %v888_v22, 1 }
 0x2da   :  { %v890_v24 = vadd.f32 %v889_v23, %v888_v22 }
 0x2dc   :  { %v891_v25 = vmul.f32 0.03125, %v890_v24 }
 0x2de   :  { %v892_v26 = vsub.f32 %v853_v9, %v891_v25  ;;  %v893_v27 = vsub.f32 %v1180_v7, %v891_v25  ;;  %v894_v28 = vsub.f32 %v863_v13, %v891_v25  ;;  %v895_v29 = vsub.f32 %v1183_v12, %v891_v25 }
 0x2e0   :  { %v896_v31 = vmul.f32 %v892_v26, %v892_v26  ;;  %v897_v32 = vmul.f32 %v893_v27, %v893_v27  ;;  %v898_v33 = vmul.f32 %v894_v28, %v894_v28  ;;  %v899_v35 = vmul.f32 %v895_v29, %v895_v29 }
 0x2e2   :  { %v900_v37 = vsel %vm478_vm4, %v896_v31, 0.0  ;;  %v901_v38 = vsel %vm478_vm4, %v897_v32, 0.0  ;;  %v903_v41 = vsel %vm478_vm4, %v898_v33, 0.0  ;;  %v905_v44 = vsel %vm478_vm4, %v899_v35, 0.0 }
 0x2e3   :  { %v902_v39 = vadd.f32 %v901_v38, %v900_v37 }
 0x2e5   :  { %v904_v43 = vadd.f32 %v903_v41, %v902_v39 }
 0x2e7   :  { %v906_v45 = vadd.f32 %v905_v44, %v904_v43 }
 0x2e9   :  { %v907_v42 = vrot.slane %v906_v45, 4 }
 0x2eb   :  { %v908_v36 = vadd.f32 %v907_v42, %v906_v45 }
 0x2ed   :  { %v909_v34 = vrot.slane %v908_v36, 2 }
 0x2ef   :  { %v910_v40 = vadd.f32 %v909_v34, %v908_v36 }
 0x2f1   :  { %v911_v46 = vrot.slane %v910_v40, 1 }
 0x2f3   :  { %v912_v47 = vadd.f32 %v911_v46, %v910_v40 }
 0x2f5   :  { %v913_v48 = vmul.f32 0.03125, %v912_v47 }
 0x2f7   :  { %v914_v49 = vadd.f32 1e-05, %v913_v48 }
 0x2f9   :  { %1226 = vrsqrt.f32 %v914_v49 }
 0x303   :  { %v1227_v51 = vpop.eup %1226 }
 0x304   :  { %v916_v52 = vmul.f32 %v1227_v51, %v876_v50 }
 0x306   :  { %v917_v54 = vmul.f32 %v916_v52, %v891_v25  ;;  %v923_v55 = vrot.slane %v916_v52, %v1683_v16 }
 0x308   :  { %v918_v56 = vsub.f32 %v877_v53, %v917_v54  ;;  %v927_v57 = vmul.f32 %v923_v55, %v863_v13  ;;  %v926_v58 = vmul.f32 %v1180_v7, %v923_v55  ;;  %v925_v60 = vmul.f32 %v923_v55, %v853_v9 }
 0x309   :  { %v928_v61 = vmul.f32 %v1183_v12, %v923_v55 }
 0x30a   :  { %v933_v62 = vrot.slane %v918_v56, %v1683_v16 }
 0x30c   :  { %v937_v3 = vadd.f32 %v933_v62, %v927_v57  ;;  %v936_v8 = vadd.f32 %v933_v62, %v926_v58  ;;  %v935_v10 = vadd.f32 %v933_v62, %v925_v60  ;;  %v938_v11 = vadd.f32 %v933_v62, %v928_v61 }
 0x30e   :  { %v1036_v14 = vadd.f32 %v1022_v1, %v936_v8  ;;  %v1035_v15 = vadd.f32 %v1017_v2, %v935_v10  ;;  %v1038_v17 = vadd.f32 %v1032_v63, %v938_v11  ;;  %v1037_v13 = vadd.f32 %v1027_v0, %v937_v3 }
 0x310   :  { %v1040_v7 = vmax.f32 %v1036_v14, 0.0  ;;  %v1039_v18 = vmax.f32 %v1035_v15, 0.0  ;;  %v1042_v9 = vmax.f32 %v1038_v17, 0.0  ;;  %v1041_v12 = vmax.f32 %v1037_v13, 0.0 }
 0x312   :  { %1044 = vst.msk [vmem:[#allocation17 + $0x8] sm:$0xff] %vm478_vm4, %v1040_v7  ;;  %1043 = vst.msk [vmem:[#allocation17] sm:$0xff] %vm478_vm4, %v1039_v18 }
 0x313   :  { %1046 = vst.msk [vmem:[#allocation17 + $0x18] sm:$0xff] %vm478_vm4, %v1042_v9  ;;  %1045 = vst.msk [vmem:[#allocation17 + $0x10] sm:$0xff] %vm478_vm4, %v1041_v12 }
 0x314   :  { %1437 = shalt.err (!%p1434_p6)
}
 0x315   :  { %s1438_s13 = scalar_lea.hbm %s1746_s9, 512 }
 0x316   :  { %p1439_p7 = scmp.ne.s32.totalorder %s1746_s9, %s1438_s13  ;;  %p1442_p8 = scmp.lt.u32.totalorder %s1438_s13, %s1746_s9 }
 0x318   :  { %p1444_p9 = pnand %p1442_p8, %p1439_p7 }
 0x31a   :  { %1447 = shalt.err (!%p1444_p9)
}
 0x31b   :  { %1058 = dma.vmem_to_hbm [thread:$0]  %s1053_s27, 512, %s1746_s9, [#allocation4], %s1467_s7, %s1467_s7, %s1468_s3  }
 0x31c   :  { %1458 = dma.done.wait [#allocation4], 512  }
 0x31d   :  { %1459 = vsyncadd [#allocation4], 4294966784 }
 0x31e   :  { %1062 = vsyncpa [#allocation3], 1 }
 0x31f   :  { %1063 = vsyncpa [#allocation6], 1 }
 0x320   :  { %1064 = vsyncpa [#allocation9], 1 }
 0x321   :  { %1065 = vsyncpa [#allocation12], 1 }
 0x322   :  { %1066 = vsyncpa [#allocation15], 1 }
 0x323   :  { %1067 = vsyncpa [#allocation4], 1 }

</bundles_post_ra>
